<compile_context>
chip_gen: v5e
topology: v5e:2x2
jax: 0.10.0
libtpu: 0.0.40
codegen_flags: <defaults>
</compile_context>

<pallas_src>
import math
from functools import partial

import jax
import jax.numpy as jnp
from jax.experimental import pallas as pl
from jax.experimental.pallas import tpu as pltpu

IN_DIM = 64      # x feature dim
HID_DIM = 32     # q/k head dim
LANES = 128      # padded feature dim (lane-dense)
SCALE = math.sqrt(64.0)   # module uses sqrt(64), not sqrt(d_k)=sqrt(32)


def _round_up(a, b):
    return (a + b - 1) // b * b


def _make_kernel(batch, n_tiles, block, hid, need_mask):
    def kernel(x_kv_ref, w_ref, b_ref, o_ref, q_sc, m_sc, l_sc, acc_sc):
        ki = pl.program_id(1)

        # Fused [Q|K] projection of the current kv block — one MXU pass, f32 accumulate.
        proj = jnp.dot(x_kv_ref[...], w_ref[...],
                       preferred_element_type=jnp.float32) + b_ref[...]

        @pl.when(ki == 0)
        def _():
            # Revolving-start map: at ki == 0 the kv block IS this query tile, so the
            # fused projection gives us the (pre-scaled) Q for free. Init accumulators.
            q_sc[...] = proj[:, :hid].astype(q_sc.dtype)
            m_sc[...] = jnp.full_like(m_sc, -jnp.inf)
            l_sc[...] = jnp.zeros_like(l_sc)
            acc_sc[...] = jnp.zeros_like(acc_sc)

        k = proj[:, hid:].astype(x_kv_ref.dtype)

        # Scores: contract the feature dim of q and k directly (no k.T materialization).
        s = jax.lax.dot_general(
            q_sc[...], k,
            dimension_numbers=(((1,), (1,)), ((), ())),
            preferred_element_type=jnp.float32)                  # (block, block)

        if need_mask:
            # Mask padded key rows (batch rounded up to a tile multiple).
            kv_block = (pl.program_id(0) + ki) % n_tiles
            col = jax.lax.broadcasted_iota(jnp.int32, (block, block), 1)
            s = jnp.where(kv_block * block + col < batch, s, -1e30)

        # Online softmax update (f32 everywhere).
        m_new = jnp.maximum(m_sc[...], jnp.max(s, axis=-1, keepdims=True))
        alpha = jnp.exp(m_sc[...] - m_new)
        p = jnp.exp(s - m_new)
        l_sc[...] = alpha * l_sc[...] + jnp.sum(p, axis=-1, keepdims=True)
        acc_sc[...] = alpha * acc_sc[...] + jnp.dot(
            p.astype(x_kv_ref.dtype), x_kv_ref[...],
            preferred_element_type=jnp.float32)
        m_sc[...] = m_new

        @pl.when(ki == n_tiles - 1)
        def _():
            inv_l = pl.reciprocal(l_sc[...], approx=True)        # EUP, not VALU
            o_ref[...] = (acc_sc[...] * inv_l).astype(o_ref.dtype)

    return kernel


def model_forward(x, wq, bq, wk, bk, *, block=128):
    """x: (B, 64); wq/wk: (64, 32) pre-transposed; bq/bk: (1, 32)."""
    B, D = x.shape
    assert D == IN_DIM

    # Tile size along the batch (= query = key) axis.
    block = max(8, min(block, _round_up(B, 8)))
    block = _round_up(block, 8)
    B_pad = _round_up(B, block)
    n_tiles = B_pad // block

    # Host-side (one-time): fold 1/sqrt(64) into the query projection and fuse Q|K.
    inv_scale = 1.0 / SCALE
    w_qk = jnp.concatenate([wq * inv_scale, wk], axis=1)          # (64, 64)
    b_qk = jnp.concatenate([bq * inv_scale, bk], axis=1)          # (1, 64)

    # Pad feature axis to 128 lanes (lane-dense loads/stores); pad batch to tile mult.
    x_p = jnp.pad(x, ((0, B_pad - B), (0, LANES - D)))            # (B_pad, 128)
    w_p = jnp.pad(w_qk, ((0, LANES - D), (0, 0)))                 # (128, 64)

    kernel = _make_kernel(B, n_tiles, block, HID_DIM, need_mask=(B_pad != B))

    flops = (2 * B_pad * LANES * 2 * HID_DIM          # fused projection
             + 2 * B_pad * B_pad * HID_DIM            # scores
             + 2 * B_pad * B_pad * LANES)             # p @ x
    bytes_accessed = 4 * (x_p.size + w_p.size + b_qk.size + B_pad * LANES)

    out = pl.pallas_call(
        kernel,
        out_shape=jax.ShapeDtypeStruct((B_pad, LANES), x.dtype),
        grid_spec=pltpu.PrefetchScalarGridSpec(
            num_scalar_prefetch=0,
            grid=(n_tiles, n_tiles),                   # (query tiles, kv tiles)
            in_specs=[
                # revolving-start kv map: kv block 0 == the query block.
                pl.BlockSpec((block, LANES),
                             lambda qi, ki: ((qi + ki) % n_tiles, 0)),
                pl.BlockSpec((LANES, 2 * HID_DIM), lambda qi, ki: (0, 0)),
                pl.BlockSpec((1, 2 * HID_DIM), lambda qi, ki: (0, 0)),
            ],
            out_specs=pl.BlockSpec((block, LANES), lambda qi, ki: (qi, 0)),
            scratch_shapes=[
                pltpu.VMEM((block, HID_DIM), x.dtype),     # q of the query tile
                pltpu.VMEM((block, 1), jnp.float32),       # running max m
                pltpu.VMEM((block, 1), jnp.float32),       # running sum l
                pltpu.VMEM((block, LANES), jnp.float32),   # output accumulator
            ],
        ),
        compiler_params=pltpu.CompilerParams(
            # query axis parallel (megacore on v7x), kv axis is the reduction.
            dimension_semantics=("parallel", "arbitrary"),
        ),
        cost_estimate=pl.CostEstimate(
            flops=int(flops),
            transcendentals=int(B_pad * B_pad + B_pad),
            bytes_accessed=int(bytes_accessed),
        ),
    )(x_p, w_p, b_qk)

    return out[:B, :D]


def _reference(x, wq, bq, wk, bk):
    q = x @ wq + bq
    k = x @ wk + bk
    s = (q @ k.T) / SCALE
    p = jax.nn.softmax(s, axis=-1)
    return p @ x


if __name__ == "__main__":
    key = jax.random.PRNGKey(0)
    kx, kwq, kbq, kwk, kbk = jax.random.split(key, 5)

    # Batch of 50 rows (non-multiple of the 32-row tile -> exercises kv masking
    # and a 2x2 grid). Feature dims fixed by the module: 64 -> 32.
    B = 50
    x = jax.random.normal(kx, (B, IN_DIM), dtype=jnp.float32)

    # Deterministic parameter init (uniform, like torch Linear default).
    bound = 1.0 / math.sqrt(IN_DIM)
    wq = jax.random.uniform(kwq, (IN_DIM, HID_DIM), jnp.float32, -bound, bound)
    bq = jax.random.uniform(kbq, (1, HID_DIM), jnp.float32, -bound, bound)
    wk = jax.random.uniform(kwk, (IN_DIM, HID_DIM), jnp.float32, -bound, bound)
    bk = jax.random.uniform(kbk, (1, HID_DIM), jnp.float32, -bound, bound)

    out = model_forward(x, wq, bq, wk, bk, block=32)
    jax.block_until_ready(out)

    ref = _reference(x, wq, bq, wk, bk)
    assert out.shape == (B, IN_DIM)
    max_err = float(jnp.max(jnp.abs(out - ref)))
    assert jnp.allclose(out, ref, atol=5e-3, rtol=5e-3), \
        f"mismatch vs reference (max |err|={max_err})"

    print("KERNEL_OK")
</pallas_src>

<mosaic_0001>
module attributes {stable_mosaic.version = 11 : i64} {
  func.func @kernel(%arg0: i32, %arg1: i32, %arg2: memref<32x128xf32, #tpu.memory_space<vmem>>, %arg3: memref<128x64xf32, #tpu.memory_space<vmem>>, %arg4: memref<1x64xf32, #tpu.memory_space<vmem>>, %arg5: memref<32x128xf32, #tpu.memory_space<vmem>>, %arg6: memref<32x32xf32, #tpu.memory_space<vmem>>, %arg7: memref<32x1xf32, #tpu.memory_space<vmem>>, %arg8: memref<32x1xf32, #tpu.memory_space<vmem>>, %arg9: memref<32x128xf32, #tpu.memory_space<vmem>>) attributes {dimension_semantics = [#tpu.dimension_semantics<parallel>, #tpu.dimension_semantics<arbitrary>], iteration_bounds = array<i64: 2, 2>, scalar_prefetch = 0 : i64, scratch_operands = 4 : i64, tpu.core_type = #tpu.core_type<tc>, window_params = [{transform_indices = @transform_0, window_bounds = array<i64: 32, 128>}, {pipeline_mode = #tpu.pipeline_mode<synchronous>, transform_indices = @transform_1, window_bounds = array<i64: 128, 64>}, {pipeline_mode = #tpu.pipeline_mode<synchronous>, transform_indices = @transform_2, window_bounds = array<i64: 1, 64>}, {transform_indices = @transform_3, window_bounds = array<i64: 32, 128>}]} {
    %c0 = arith.constant 0 : index
    %c0_0 = arith.constant 0 : index
    %0 = vector.load %arg2[%c0, %c0_0] : memref<32x128xf32, #tpu.memory_space<vmem>>, vector<32x128xf32>
    %c0_1 = arith.constant 0 : index
    %c0_2 = arith.constant 0 : index
    %1 = vector.load %arg3[%c0_1, %c0_2] : memref<128x64xf32, #tpu.memory_space<vmem>>, vector<128x64xf32>
    %cst = arith.constant dense<0.000000e+00> : vector<32x64xf32>
    %2 = tpu.matmul %0, %1, %cst {dimension_numbers = #tpu.dot_dimension_numbers<[1], [0], [0], [1], [0, 0, 1, 1], [], []>} : vector<32x128xf32>, vector<128x64xf32>, vector<32x64xf32> -> vector<32x64xf32>
    %c0_3 = arith.constant 0 : index
    %c0_4 = arith.constant 0 : index
    %3 = vector.load %arg4[%c0_3, %c0_4] : memref<1x64xf32, #tpu.memory_space<vmem>>, vector<1x64xf32>
    %4 = vector.broadcast %3 : vector<1x64xf32> to vector<32x64xf32>
    %5 = arith.addf %2, %4 : vector<32x64xf32>
    %c0_i32 = arith.constant 0 : i32
    %6 = arith.cmpi eq, %arg1, %c0_i32 : i32
    %7 = arith.extui %6 : i1 to i32
    %c0_i32_5 = arith.constant 0 : i32
    %8 = arith.cmpi ne, %7, %c0_i32_5 : i32
    scf.if %8 {
      %58 = vector.extract_strided_slice %5 {offsets = [0, 0], sizes = [32, 32], strides = [1, 1]} : vector<32x64xf32> to vector<32x32xf32>
      %c0_35 = arith.constant 0 : index
      %c0_36 = arith.constant 0 : index
      %59 = vector.load %arg6[%c0_35, %c0_36] : memref<32x32xf32, #tpu.memory_space<vmem>>, vector<32x32xf32>
      tpu.vector_store %arg6[%c0_35, %c0_36], %58 {strides = array<i32>} : memref<32x32xf32, #tpu.memory_space<vmem>>, vector<32x32xf32>,
      %cst_37 = arith.constant 0xFF800000 : f32
      %60 = vector.broadcast %cst_37 : f32 to vector<32x1xf32>
      %c0_38 = arith.constant 0 : index
      %c0_39 = arith.constant 0 : index
      %61 = vector.load %arg7[%c0_38, %c0_39] : memref<32x1xf32, #tpu.memory_space<vmem>>, vector<32x1xf32>
      tpu.vector_store %arg7[%c0_38, %c0_39], %60 {strides = array<i32>} : memref<32x1xf32, #tpu.memory_space<vmem>>, vector<32x1xf32>,
      %cst_40 = arith.constant 0.000000e+00 : f32
      %62 = vector.broadcast %cst_40 : f32 to vector<32x1xf32>
      %c0_41 = arith.constant 0 : index
      %c0_42 = arith.constant 0 : index
      %63 = vector.load %arg8[%c0_41, %c0_42] : memref<32x1xf32, #tpu.memory_space<vmem>>, vector<32x1xf32>
      tpu.vector_store %arg8[%c0_41, %c0_42], %62 {strides = array<i32>} : memref<32x1xf32, #tpu.memory_space<vmem>>, vector<32x1xf32>,
      %cst_43 = arith.constant 0.000000e+00 : f32
      %64 = vector.broadcast %cst_43 : f32 to vector<32x128xf32>
      %c0_44 = arith.constant 0 : index
      %c0_45 = arith.constant 0 : index
      %65 = vector.load %arg9[%c0_44, %c0_45] : memref<32x128xf32, #tpu.memory_space<vmem>>, vector<32x128xf32>
      tpu.vector_store %arg9[%c0_44, %c0_45], %64 {strides = array<i32>} : memref<32x128xf32, #tpu.memory_space<vmem>>, vector<32x128xf32>,
    } else {
    }
    %9 = vector.extract_strided_slice %5 {offsets = [0, 32], sizes = [32, 32], strides = [1, 1]} : vector<32x64xf32> to vector<32x32xf32>
    %c0_6 = arith.constant 0 : index
    %c0_7 = arith.constant 0 : index
    %10 = vector.load %arg6[%c0_6, %c0_7] : memref<32x32xf32, #tpu.memory_space<vmem>>, vector<32x32xf32>
    %cst_8 = arith.constant dense<0.000000e+00> : vector<32x32xf32>
    %11 = tpu.matmul %10, %9, %cst_8 {dimension_numbers = #tpu.dot_dimension_numbers<[1], [1], [0], [0], [0, 0, 1, 0], [], []>} : vector<32x32xf32>, vector<32x32xf32>, vector<32x32xf32> -> vector<32x32xf32>
    %12 = arith.addi %arg0, %arg1 : i32
    %c2_i32 = arith.constant 2 : i32
    %c0_i32_9 = arith.constant 0 : i32
    %13 = arith.cmpi eq, %c2_i32, %c0_i32_9 : i32
    %c1_i32 = arith.constant 1 : i32
    %14 = arith.select %13, %c1_i32, %c2_i32 : i32
    %15 = arith.remsi %12, %14 : i32
    %c0_i32_10 = arith.constant 0 : i32
    %16 = arith.cmpi ne, %15, %c0_i32_10 : i32
    %c0_i32_11 = arith.constant 0 : i32
    %17 = arith.cmpi slt, %15, %c0_i32_11 : i32
    %c0_i32_12 = arith.constant 0 : i32
    %18 = arith.cmpi slt, %14, %c0_i32_12 : i32
    %19 = arith.xori %17, %18 : i1
    %20 = arith.andi %19, %16 : i1
    %21 = arith.addi %15, %14 : i32
    %22 = arith.select %20, %21, %15 : i32
    %23 = tpu.iota {dimensions = array<i32: 1>} : vector<32x32xi32>
    %c32_i32 = arith.constant 32 : i32
    %24 = arith.muli %22, %c32_i32 : i32
    %25 = vector.broadcast %24 : i32 to vector<32x32xi32>
    %26 = arith.addi %25, %23 : vector<32x32xi32>
    %c50_i32 = arith.constant 50 : i32
    %27 = vector.broadcast %c50_i32 : i32 to vector<32x32xi32>
    %28 = arith.cmpi slt, %26, %27 : vector<32x32xi32>
    %cst_13 = arith.constant -1.000000e+30 : f32
    %29 = vector.broadcast %cst_13 : f32 to vector<32x32xf32>
    %30 = arith.select %28, %11, %29 : vector<32x32xi1>, vector<32x32xf32>
    %c0_14 = arith.constant 0 : index
    %c0_15 = arith.constant 0 : index
    %31 = vector.load %arg7[%c0_14, %c0_15] : memref<32x1xf32, #tpu.memory_space<vmem>>, vector<32x1xf32>
    %cst_16 = arith.constant dense<0xFF800000> : vector<32xf32>
    %32 = vector.multi_reduction <maximumf>, %30, %cst_16 [1] : vector<32x32xf32> to vector<32xf32>
    %33 = vector.shape_cast %32 : vector<32xf32> to vector<32x1xf32>
    %34 = arith.maximumf %31, %33 : vector<32x1xf32>
    %c0_17 = arith.constant 0 : index
    %c0_18 = arith.constant 0 : index
    %35 = vector.load %arg7[%c0_17, %c0_18] : memref<32x1xf32, #tpu.memory_space<vmem>>, vector<32x1xf32>
    %36 = arith.subf %35, %34 : vector<32x1xf32>
    %37 = math.exp %36 : vector<32x1xf32>
    %38 = vector.broadcast %34 : vector<32x1xf32> to vector<32x32xf32>
    %39 = arith.subf %30, %38 : vector<32x32xf32>
    %40 = math.exp %39 : vector<32x32xf32>
    %c0_19 = arith.constant 0 : index
    %c0_20 = arith.constant 0 : index
    %41 = vector.load %arg8[%c0_19, %c0_20] : memref<32x1xf32, #tpu.memory_space<vmem>>, vector<32x1xf32>
    %42 = arith.mulf %37, %41 : vector<32x1xf32>
    %cst_21 = arith.constant dense<0.000000e+00> : vector<32xf32>
    %43 = vector.multi_reduction <add>, %40, %cst_21 [1] : vector<32x32xf32> to vector<32xf32>
    %44 = vector.shape_cast %43 : vector<32xf32> to vector<32x1xf32>
    %45 = arith.addf %42, %44 : vector<32x1xf32>
    %c0_22 = arith.constant 0 : index
    %c0_23 = arith.constant 0 : index
    %46 = vector.load %arg8[%c0_22, %c0_23] : memref<32x1xf32, #tpu.memory_space<vmem>>, vector<32x1xf32>
    tpu.vector_store %arg8[%c0_22, %c0_23], %45 {strides = array<i32>} : memref<32x1xf32, #tpu.memory_space<vmem>>, vector<32x1xf32>,
    %c0_24 = arith.constant 0 : index
    %c0_25 = arith.constant 0 : index
    %47 = vector.load %arg9[%c0_24, %c0_25] : memref<32x128xf32, #tpu.memory_space<vmem>>, vector<32x128xf32>
    %48 = vector.broadcast %37 : vector<32x1xf32> to vector<32x128xf32>
    %49 = arith.mulf %48, %47 : vector<32x128xf32>
    %c0_26 = arith.constant 0 : index
    %c0_27 = arith.constant 0 : index
    %50 = vector.load %arg2[%c0_26, %c0_27] : memref<32x128xf32, #tpu.memory_space<vmem>>, vector<32x128xf32>
    %cst_28 = arith.constant dense<0.000000e+00> : vector<32x128xf32>
    %51 = tpu.matmul %40, %50, %cst_28 {dimension_numbers = #tpu.dot_dimension_numbers<[1], [0], [0], [1], [0, 0, 1, 1], [], []>} : vector<32x32xf32>, vector<32x128xf32>, vector<32x128xf32> -> vector<32x128xf32>
    %52 = arith.addf %49, %51 : vector<32x128xf32>
    %c0_29 = arith.constant 0 : index
    %c0_30 = arith.constant 0 : index
    %53 = vector.load %arg9[%c0_29, %c0_30] : memref<32x128xf32, #tpu.memory_space<vmem>>, vector<32x128xf32>
    tpu.vector_store %arg9[%c0_29, %c0_30], %52 {strides = array<i32>} : memref<32x128xf32, #tpu.memory_space<vmem>>, vector<32x128xf32>,
    %c0_31 = arith.constant 0 : index
    %c0_32 = arith.constant 0 : index
    %54 = vector.load %arg7[%c0_31, %c0_32] : memref<32x1xf32, #tpu.memory_space<vmem>>, vector<32x1xf32>
    tpu.vector_store %arg7[%c0_31, %c0_32], %34 {strides = array<i32>} : memref<32x1xf32, #tpu.memory_space<vmem>>, vector<32x1xf32>,
    %c1_i32_33 = arith.constant 1 : i32
    %55 = arith.cmpi eq, %arg1, %c1_i32_33 : i32
    %56 = arith.extui %55 : i1 to i32
    %c0_i32_34 = arith.constant 0 : i32
    %57 = arith.cmpi ne, %56, %c0_i32_34 : i32
    scf.if %57 {
      %c0_35 = arith.constant 0 : index
      %c0_36 = arith.constant 0 : index
      %58 = vector.load %arg8[%c0_35, %c0_36] : memref<32x1xf32, #tpu.memory_space<vmem>>, vector<32x1xf32>
      %59 = tpu.reciprocal %58 {approx = true} : vector<32x1xf32> -> vector<32x1xf32>
      %c0_37 = arith.constant 0 : index
      %c0_38 = arith.constant 0 : index
      %60 = vector.load %arg9[%c0_37, %c0_38] : memref<32x128xf32, #tpu.memory_space<vmem>>, vector<32x128xf32>
      %61 = vector.broadcast %59 : vector<32x1xf32> to vector<32x128xf32>
      %62 = arith.mulf %60, %61 : vector<32x128xf32>
      %c0_39 = arith.constant 0 : index
      %c0_40 = arith.constant 0 : index
      %63 = vector.load %arg5[%c0_39, %c0_40] : memref<32x128xf32, #tpu.memory_space<vmem>>, vector<32x128xf32>
      tpu.vector_store %arg5[%c0_39, %c0_40], %62 {strides = array<i32>} : memref<32x128xf32, #tpu.memory_space<vmem>>, vector<32x128xf32>,
    } else {
    }
    return
  }
  func.func @transform_0(%arg0: i32, %arg1: i32) -> (i32, i32) {
    %0 = arith.addi %arg0, %arg1 : i32
    %c2_i32 = arith.constant 2 : i32
    %c0_i32 = arith.constant 0 : i32
    %1 = arith.cmpi eq, %c2_i32, %c0_i32 : i32
    %c1_i32 = arith.constant 1 : i32
    %2 = arith.select %1, %c1_i32, %c2_i32 : i32
    %3 = arith.remsi %0, %2 : i32
    %c0_i32_0 = arith.constant 0 : i32
    %4 = arith.cmpi ne, %3, %c0_i32_0 : i32
    %c0_i32_1 = arith.constant 0 : i32
    %5 = arith.cmpi slt, %3, %c0_i32_1 : i32
    %c0_i32_2 = arith.constant 0 : i32
    %6 = arith.cmpi slt, %2, %c0_i32_2 : i32
    %7 = arith.xori %5, %6 : i1
    %8 = arith.andi %7, %4 : i1
    %9 = arith.addi %3, %2 : i32
    %10 = arith.select %8, %9, %3 : i32
    %c0_i32_3 = arith.constant 0 : i32
    %c0_i32_4 = arith.constant 0 : i32
    return %10, %c0_i32_3 : i32, i32
  }
  func.func @transform_1(%arg0: i32, %arg1: i32) -> (i32, i32) {
    %c0_i32 = arith.constant 0 : i32
    %c0_i32_0 = arith.constant 0 : i32
    %c0_i32_1 = arith.constant 0 : i32
    return %c0_i32, %c0_i32_0 : i32, i32
  }
  func.func @transform_2(%arg0: i32, %arg1: i32) -> (i32, i32) {
    %c0_i32 = arith.constant 0 : i32
    %c0_i32_0 = arith.constant 0 : i32
    %c0_i32_1 = arith.constant 0 : i32
    return %c0_i32, %c0_i32_0 : i32, i32
  }
  func.func @transform_3(%arg0: i32, %arg1: i32) -> (i32, i32) {
    %c0_i32 = arith.constant 0 : i32
    %c0_i32_0 = arith.constant 0 : i32
    return %arg0, %c0_i32 : i32, i32
  }
}

</mosaic_0001>

<bundles_post_ra>
// kernel: tpu_custom_call.1
= control target key start
LH: loop header
LB: loop body
LE: loop exit
PB: predicated region body
PF: predicated region fallthrough
CT: control target
= control target key end

     0   :  { %8 = vsyncpa [#allocation7], 0  ;;  %s1292_s0 = inlined_call_operand.vmem [shape: f32[64,128], index: 0, kind: input, shape index: {}]   ;;  %s1293_s1 = inlined_call_operand.vmem [shape: f32[128,64], index: 1, kind: input, shape index: {}]   ;;  %s1294_s2 = inlined_call_operand.vmem [shape: f32[1,64], index: 2, kind: input, shape index: {}]   ;;  %s1295_s3 = inlined_call_operand.hbm [shape: f32[64,128], index: 3, kind: output, shape index: {}]  }
   0x1   :  { %10 = vsyncpa [#allocation7 + $0x1], 0  ;;  %s1038_s12 = smov 0   ;;  %s1040_s13 = smov 0  }
   0x2   :  { %s1042_s14 = smov 0   ;;  %s1044_s15 = smov 0  }
   0x3   :  { %s1046_s16 = smov 0   ;;  %s1048_s17 = smov 0  }
   0x4   :  { %s1050_s18 = smov 0   ;;  %s1052_s19 = smov 0  }
   0x5 LB: > { %s750_s20 = sadd.s32 4294967295, %s1009_s19   ;;  %s751_s21 = sadd.s32 4294967294, %s1009_s19   ;;  %s1009_s19 = sphi %s1052_s19, %s16_s19   ;;  %s1005_s18 = sphi %s1050_s18, %s1304_s18   ;;  %s1001_s17 = sphi %s1048_s17, %s1303_s17   ;;  %s997_s16 = sphi %s1046_s16, %s1302_s16   ;;  %s993_s15 = sphi %s1044_s15, %s1301_s15   ;;  %s989_s14 = sphi %s1042_s14, %s1300_s14   ;;  %s985_s13 = sphi %s1040_s13, %s1299_s13   ;;  %s981_s12 = sphi %s1038_s12, %s1298_s12  }
   0x6   : > { %s25_s22 = sadd.s32 1, %s1001_s17  ;;  %s28_s23 = sadd.s32 1, %s1005_s18 }
   0x7   : > { %p26_p0 = scmp.ge.s32.totalorder %s25_s22, 2  ;;  %p139_p1 = scmp.ne.s32.totalorder %s989_s14, %s985_s13 }
   0x8   : > { %p140_p2 = scmp.eq.s32.totalorder %s750_s20, 3  ;;  %p145_p4 = scmp.ne.s32.totalorder %s985_s13, %s981_s12 }
   0x9   : > { %s1306_s22 = smov (%p26_p0, %s25_s22), 0  ;;  %s1308_s23 = smov (!%p26_p0, %s28_s23), %s1005_s18 }
   0xa   : > { %p1087_p3 = por %p140_p2, %p139_p1  ;;  %p30_p5 = scmp.ge.s32.totalorder %s1308_s23, 2 }
   0xb   : > { %p146_p6 = scmp.eq.s32.totalorder %s751_s21, 3  ;;  %p760_p7 = scmp.ge.s32.totalorder %s1009_s19, 1 }
   0xc   : > { %p205_p8 = scmp.lt.s32.totalorder %s1009_s19, 5  ;;  %s1310_s23 = smov (%p30_p5, %s1308_s23), 0 }
   0xd   : > { %p1097_p9 = por %p146_p6, %p145_p4  ;;  %s126_s26 = ssub.s32 %s1005_s18, %s1310_s23 }
   0xe   : > { %p206_p10 = pnand %p760_p7, %p205_p8  ;;  %s129_s27 = sadd.s32 1, %s989_s14 }
   0xf   : > { %p127_p11 = scmp.eq.s32.totalorder %s126_s26, 0  ;;  %s239_s6 = sand.u32 (!%p206_p10), 1, %s985_s13  }
  0x10   : > { %209 = sbr.rel (%p206_p10) target bundleno = 1004 (0x3ec), region = 32  ;;  %s242_s7 = sadd.s32 (!%p206_p10), %s993_s15, %s997_s16 }
  0x11   : > { %s1105_s28 = scalar_select %p127_p11, %s989_s14, %s129_s27  }
  0x12   : > { %s1118_s8 = sshll.u32 (!%p206_p10), %s239_s6, 5  ;;  %p243_p12 = scmp.lt.s32.totalorder (!%p206_p10), %s242_s7, 0 }
  0x13   : > { %s244_s11 = ssub.s32 (!%p206_p10), 0, %s242_s7  ;;  %s1178_s30 = scalar_lea.vmem (!%p206_p10), [#allocation6], %s1118_s8 }
  0x14   : > { %s762_s20 = smin.u32 (!%p206_p10), %s244_s11, %s242_s7  ;;  %p767_p1 = scmp.ne.s32.totalorder (!%p206_p10), %s993_s15, 0 }
  0x15   : > { %v294_v0 = vld [vmem:[%s1293_s1 + $0x78] sm:$0xff]  ;;  %v293_v1 = vld [vmem:[%s1293_s1 + $0x70] sm:$0xff]  ;;  %v292_v2 = vld [vmem:[%s1293_s1 + $0x68] sm:$0xff]  ;;  %s246_s27 = sand.u32 1, %s762_s20  }
  0x16   : > { %791 = vmatpush.msra.mxu3 %v294_v0  ;;  %299 = vmatpush.msra.mxu0 %v294_v0  ;;  %v291_v3 = vld [vmem:[%s1293_s1 + $0x60] sm:$0xff]  ;;  %s247_s29 = ssub.s32 0, %s246_s27  ;;  %v290_v4 = vld [vmem:[%s1293_s1 + $0x58] sm:$0xff]  ;;  %v289_v5 = vld [vmem:[%s1293_s1 + $0x50] sm:$0xff] }
  0x17   : > { %s1312_s29 = smov (!%p243_p12, %s247_s29), %s246_s27  ;;  %v288_v6 = vld [vmem:[%s1293_s1 + $0x48] sm:$0xff]  ;;  %v287_v7 = vld [vmem:[%s1293_s1 + $0x40] sm:$0xff]  ;;  %v286_v8 = vld [vmem:[%s1293_s1 + $0x38] sm:$0xff] }
  0x18   : > { %792 = vmatpush.msra.mxu3 %v293_v1  ;;  %300 = vmatpush.msra.mxu0 %v293_v1  ;;  %p764_p13 = scmp.lt.s32.totalorder %s1312_s29, 0  ;;  %s253_s7 = sadd.s32 2, %s1312_s29  ;;  %v285_v9 = vld [vmem:[%s1293_s1 + $0x30] sm:$0xff]  ;;  %v284_v10 = vld [vmem:[%s1293_s1 + $0x28] sm:$0xff]  ;;  %v283_v11 = vld [vmem:[%s1293_s1 + $0x20] sm:$0xff] }
  0x19   : > { %v282_v12 = vld [vmem:[%s1293_s1 + $0x18] sm:$0xff]  ;;  %v281_v13 = vld [vmem:[%s1293_s1 + $0x10] sm:$0xff]  ;;  %v280_v14 = vld [vmem:[%s1293_s1 + $0x8] sm:$0xff] }
  0x1a   : > { %793 = vmatpush.msra.mxu3 %v292_v2  ;;  %301 = vmatpush.msra.mxu0 %v292_v2  ;;  %s1314_s7 = smov (!%p764_p13, %s253_s7), %s1312_s29  ;;  %v279_v15 = vld [vmem:[%s1293_s1] sm:$0xff] }
  0x1b   : > { %s765_s26 = sshll.u32 %s1314_s7, 2  ;;  %v885_v20 = vld [vmem:[%s1294_s2] ss:$0 sm:$0xff] }
  0x1c   : > { %794 = vmatpush.msra.mxu3 %v291_v3  ;;  %302 = vmatpush.msra.mxu0 %v291_v3  ;;  %p256_p0 = scmp.lt.s32.totalorder %s765_s26, 7 }
  0x1e   : > { %795 = vmatpush.msra.mxu3 %v290_v4  ;;  %303 = vmatpush.msra.mxu0 %v290_v4  ;;  %s1316_s26 = smov (!%p256_p0, %s765_s26), 7 }
  0x1f   : > { %s766_s27 = sshll.u32 %s1316_s26, 3 }
  0x20   : > { %796 = vmatpush.msra.mxu3 %v289_v5  ;;  %304 = vmatpush.msra.mxu0 %v289_v5  ;;  %s1165_s11 = scalar_lea.vmem %s1292_s0, %s766_s27 }
  0x21   : > { %v277_v16 = vld [vmem:[%s1165_s11 + $0x10] sm:$0xff]  ;;  %v275_v17 = vld [vmem:[%s1165_s11] sm:$0xff]  ;;  %v278_v18 = vld [vmem:[%s1165_s11 + $0x18] sm:$0xff] }
  0x22   : > { %797 = vmatpush.msra.mxu3 %v288_v6  ;;  %305 = vmatpush.msra.mxu0 %v288_v6  ;;  %v276_v19 = vld [vmem:[%s1165_s11 + $0x8] sm:$0xff] }
  0x24   : > { %798 = vmatpush.msra.mxu3 %v287_v7  ;;  %306 = vmatpush.msra.mxu0 %v287_v7 }
  0x26   : > { %799 = vmatpush.msra.mxu3 %v286_v8  ;;  %307 = vmatpush.msra.mxu0 %v286_v8 }
  0x28   : > { %800 = vmatpush.msra.mxu3 %v285_v9  ;;  %308 = vmatpush.msra.mxu0 %v285_v9 }
  0x2a   : > { %801 = vmatpush.msra.mxu3 %v284_v10  ;;  %309 = vmatpush.msra.mxu0 %v284_v10 }
  0x2c   : > { %802 = vmatpush.msra.mxu3 %v283_v11  ;;  %310 = vmatpush.msra.mxu0 %v283_v11 }
  0x2e   : > { %803 = vmatpush.msra.mxu3 %v282_v12  ;;  %311 = vmatpush.msra.mxu0 %v282_v12 }
  0x30   : > { %804 = vmatpush.msra.mxu3 %v281_v13  ;;  %312 = vmatpush.msra.mxu0 %v281_v13 }
  0x32   : > { %805 = vmatpush.msra.mxu3 %v280_v14  ;;  %313 = vmatpush.msra.mxu0 %v280_v14 }
  0x34   : > { %806 = vmatpush.msra.mxu3 %v279_v15  ;;  %314 = vmatpush.msra.mxu0 %v279_v15 }
  0x35   : > { %321 = vmatmul.f32.vlgmr.msra.gmra.mxu3 %v277_v16  ;;  %315 = vmatmul.f32.vlgmr.msra.gmra.mxu0 %v275_v17 }
  0x3d   : > { %324 = vmatmul.f32.gmra.mxu3 %v278_v18  ;;  %318 = vmatmul.f32.gmra.mxu0 %v276_v19 }
  0xb2   : > { %v316_v21 = vpop.f32.mrf.mxu0 }
  0xb3   : > { %v317_v22 = vadd.f32 %v885_v20, %v316_v21 }
  0xb8   : > { %v322_v23 = vpop.f32.mrf.mxu3 }
  0xb9   : > { %v323_v24 = vadd.f32 %v885_v20, %v322_v23 }
  0xba   : > { %v319_v25 = vpop.f32.mrf.mxu0 }
  0xbb   : > { %v320_v26 = vadd.f32 %v885_v20, %v319_v25 }
  0xbd   : > { %331 = sbr.rel (%p767_p1) target bundleno = 211 (0xd3), region = 36 }
  0xc0   : > { %v325_v27 = vpop.f32.mrf.mxu3 }
  0xc1   : > { %v326_v28 = vadd.f32 %v885_v20, %v325_v27 }
  0xc2   : > { %vm332_vm0 = vcmask 261120   ;;  %vm337_vm1 = vcmask 7168   ;;  %v1011_v29 = vmov -inf   ;;  %v1012_v30 = vmov 0.0  }
  0xc3   : > { %333 = vst.msk [vmem:[#allocation2] sm:$0xff] %vm332_vm0, %v317_v22 }
  0xc4   : > { %334 = vst.msk [vmem:[#allocation2 + $0x8] sm:$0xff] %vm332_vm0, %v320_v26 }
  0xc5   : > { %335 = vst.msk [vmem:[#allocation2 + $0x10] sm:$0xff] %vm332_vm0, %v323_v24 }
  0xc6   : > { %336 = vst.msk [vmem:[#allocation2 + $0x18] sm:$0xff] %vm332_vm0, %v326_v28 }
  0xc7   : > { %338 = vst.msk [vmem:[#allocation3] sm:$0xff] %vm337_vm1, %v1011_v29 }
  0xc8   : > { %339 = vst.msk [vmem:[#allocation3 + $0x8] sm:$0xff] %vm337_vm1, %v1011_v29 }
  0xc9   : > { %340 = vst.msk [vmem:[#allocation3 + $0x10] sm:$0xff] %vm337_vm1, %v1011_v29 }
  0xca   : > { %341 = vst.msk [vmem:[#allocation3 + $0x18] sm:$0xff] %vm337_vm1, %v1011_v29 }
  0xcb   : > { %342 = vst.msk [vmem:[#allocation4] sm:$0xff] %vm337_vm1, %v1012_v30 }
  0xcc   : > { %343 = vst.msk [vmem:[#allocation4 + $0x8] sm:$0xff] %vm337_vm1, %v1012_v30 }
  0xcd   : > { %344 = vst.msk [vmem:[#allocation4 + $0x10] sm:$0xff] %vm337_vm1, %v1012_v30 }
  0xce   : > { %345 = vst.msk [vmem:[#allocation4 + $0x18] sm:$0xff] %vm337_vm1, %v1012_v30 }
  0xcf   : > { %346 = vst [vmem:[#allocation5 + $0x10] sm:$0xff] %v1012_v30 }
  0xd0   : > { %347 = vst [vmem:[#allocation5] sm:$0xff] %v1012_v30 }
  0xd1   : > { %348 = vst [vmem:[#allocation5 + $0x18] sm:$0xff] %v1012_v30 }
  0xd2   : > { %349 = vst [vmem:[#allocation5 + $0x8] sm:$0xff] %v1012_v30 }
  0xd3 PF: > { %s1013_s8 = smov 96   ;;  %vm366_vm2 = vcmask 261120   ;;  %v350_v35 = vld [vmem:[#allocation2] sm:$0xff]  ;;  %v351_v36 = vld [vmem:[#allocation2 + $0x8] sm:$0xff]  ;;  %v352_v37 = vld [vmem:[#allocation2 + $0x10] sm:$0xff]  ;;  %v429_v39 = vlaneseq  ;;  %s779_s4 = sshll.u32 %s1314_s7, 5 }
  0xd4   : > { %364 = vrot.lane.b32.xlu0 %v326_v28, %s1013_s8  ;;  %360 = vrot.lane.b32.xlu1 %v320_v26, %s1013_s8  ;;  %v353_v38 = vld [vmem:[#allocation2 + $0x18] sm:$0xff]  ;;  %v432_v41 = vstv %s779_s4  ;;  %v1014_v55 = vmov 0   ;;  %v439_v56 = vld [vmem:[#allocation3] sm:$0xff]  ;;  %vm527_vm4 = vcmask 7168   ;;  %v440_v61 = vld [vmem:[#allocation3 + $0x8] sm:$0xff]  ;;  %p784_p2 = scmp.ne.s32.totalorder %s993_s15, 1 }
  0xd5   : > { %v430_v40 = vand.u32 127, %v429_v39  ;;  %886 = vset.pattern.permute.xlu2 %v1014_v55  ;;  %887 = vset.pattern.permute.xlu1 %v1014_v55  ;;  %v441_v1 = vld [vmem:[#allocation3 + $0x10] sm:$0xff]  ;;  %v442_v7 = vld [vmem:[#allocation3 + $0x18] sm:$0xff]  ;;  %v561_v18 = vld [vmem:[%s1165_s11 + $0x8] sm:$0xff] }
  0xd6   : > { %888 = vset.pattern.permute.xlu0 %v1014_v55  ;;  %v563_v16 = vld [vmem:[%s1165_s11 + $0x18] sm:$0xff]  ;;  %v562_v17 = vld [vmem:[%s1165_s11 + $0x10] sm:$0xff]  ;;  %v560_v19 = vld [vmem:[%s1165_s11] sm:$0xff] }
  0xd7   : > { %v433_v42 = vadd.s32 %v432_v41, %v430_v40  ;;  %588 = vmatpush.msra.mxu2 %v563_v16 }
  0xd9   : > { %vm434_vm3 = vcmp.lt.s32.totalorder %v433_v42, 50  ;;  %589 = vmatpush.msra.mxu2 %v562_v17  ;;  %v503_v42 = vld [vmem:[#allocation4] sm:$0xff] }
  0xdb   : > { %590 = vmatpush.msra.mxu2 %v561_v18 }
  0xdc   : > { %362 = vrot.lane.b32.xlu0 %v323_v24, %s1013_s8  ;;  %358 = vrot.lane.b32.xlu1 %v317_v22, %s1013_s8 }
  0xdd   : > { %591 = vmatpush.msra.mxu2 %v560_v19 }
 0x146   : > { %v365_v31 = vpop.permute.xlu0 %364  ;;  %v361_v32 = vpop.permute.xlu1 %360 }
 0x147   : > { %768 = vmatpush.xpose.msk.msra.mxu1 %vm366_vm2, %v365_v31 }
 0x14e   : > { %v363_v33 = vpop.permute.xlu0 %362  ;;  %v359_v34 = vpop.permute.xlu1 %358 }
 0x14f   : > { %769 = vmatpush.xpose.msk.msra.mxu1 %vm366_vm2, %v363_v33 }
 0x153   : > { %770 = vmatpush.xpose.msk.msra.mxu1 %vm366_vm2, %v361_v32 }
 0x157   : > { %771 = vmatpush.xpose.msk.msra.mxu1 %vm366_vm2, %v359_v34 }
 0x15a   : > { %772 = vmatmul.msk.f32.vlgmr.msra.gmra.mxu1 %vm366_vm2, %v350_v35 }
 0x162   : > { %773 = vmatmul.msk.f32.gmra.mxu1 %vm366_vm2, %v351_v36 }
 0x16a   : > { %774 = vmatmul.msk.f32.gmra.mxu1 %vm366_vm2, %v352_v37 }
 0x172   : > { %775 = vmatmul.msk.f32.gmra.mxu1 %vm366_vm2, %v353_v38 }
 0x1d7   : > { %v404_v43 = vpop.f32.mrf.mxu1 }
 0x1d8   : > { %v1190_v44 = vsel %vm434_vm3, %v404_v43, -1e+30 }
 0x1d9   : > { %v443_v45 = vsel %vm366_vm2, %v1190_v44, -inf }
 0x1da   : > { %444 = vmax.xlane.f32.xlu2 %v443_v45 }
 0x1df   : > { %v407_v46 = vpop.f32.mrf.mxu1 }
 0x1e0   : > { %v1194_v47 = vsel %vm434_vm3, %v407_v46, -1e+30 }
 0x1e1   : > { %v446_v48 = vsel %vm366_vm2, %v1194_v47, -inf }
 0x1e2   : > { %447 = vmax.xlane.f32.xlu2 %v446_v48 }
 0x1e7   : > { %v410_v49 = vpop.f32.mrf.mxu1 }
 0x1e8   : > { %v1198_v50 = vsel %vm434_vm3, %v410_v49, -1e+30 }
 0x1e9   : > { %v449_v51 = vsel %vm366_vm2, %v1198_v50, -inf }
 0x1ea   : > { %450 = vmax.xlane.f32.xlu0 %v449_v51 }
 0x1ef   : > { %v413_v52 = vpop.f32.mrf.mxu1 }
 0x1f0   : > { %v1202_v53 = vsel %vm434_vm3, %v413_v52, -1e+30  ;;  %v532_v52 = vld [vmem:[#allocation5 + $0x10] sm:$0xff] }
 0x1f1   : > { %v452_v54 = vsel %vm366_vm2, %v1202_v53, -inf }
 0x1f2   : > { %453 = vmax.xlane.f32.xlu1 %v452_v54 }
 0x24d   : > { %v445_v57 = vpop.xlane.xlu2 %444 }
 0x24e   : > { %v455_v58 = vmax.f32 %v439_v56, %v445_v57 }
 0x250   : > { %v459_v59 = vsub.f32 %v439_v56, %v455_v58  ;;  %613 = vst.msk [vmem:[#allocation3] sm:$0xff] %vm527_vm4, %v455_v58  ;;  %473 = vperm.xlu2 %886, %v455_v58  }
 0x252   : > { %v463_v60 = vmul.f32 1.442695, %v459_v59 }
 0x254   : > { %889 = vpow2.f32 %v463_v60  ;;  %v533_v60 = vld [vmem:[#allocation5] sm:$0xff] }
 0x255   : > { %v448_v62 = vpop.xlane.xlu2 %447 }
 0x256   : > { %v456_v63 = vmax.f32 %v440_v61, %v448_v62 }
 0x258   : > { %614 = vst.msk [vmem:[#allocation3 + $0x8] sm:$0xff] %vm527_vm4, %v456_v63  ;;  %478 = vperm.xlu2 %886, %v456_v63   ;;  %v460_v5 = vsub.f32 %v440_v61, %v456_v63  ;;  %v506_v61 = vld [vmem:[#allocation4 + $0x18] sm:$0xff] }
 0x25a   : > { %v1208_v0 = vpop.eup %889  ;;  %v465_v8 = vmul.f32 1.442695, %v460_v5 }
 0x25b   : > { %538 = vperm.xlu1 %887, %v1208_v0   ;;  %v507_v43 = vmul.f32 %v1208_v0, %v503_v42 }
 0x25d   : > { %v451_v2 = vpop.xlane.xlu0 %450 }
 0x25e   : > { %v457_v3 = vmax.f32 %v441_v1, %v451_v2 }
 0x260   : > { %v461_v4 = vsub.f32 %v441_v1, %v457_v3  ;;  %615 = vst.msk [vmem:[#allocation3 + $0x10] sm:$0xff] %vm527_vm4, %v457_v3  ;;  %483 = vperm.xlu2 %886, %v457_v3  }
 0x262   : > { %v467_v6 = vmul.f32 1.442695, %v461_v4  ;;  %v534_v4 = vld [vmem:[#allocation5 + $0x18] sm:$0xff] }
 0x264   : > { %891 = vpow2.f32 %v467_v6 }
 0x265   : > { %v454_v9 = vpop.xlane.xlu1 %453  ;;  %893 = vpow2.f32 %v465_v8  ;;  %v535_v8 = vld [vmem:[#allocation5 + $0x8] sm:$0xff] }
 0x266   : > { %v458_v10 = vmax.f32 %v442_v7, %v454_v9 }
 0x268   : > { %616 = vst.msk [vmem:[#allocation3 + $0x18] sm:$0xff] %vm527_vm4, %v458_v10  ;;  %488 = vperm.xlu2 %886, %v458_v10   ;;  %v462_v11 = vsub.f32 %v442_v7, %v458_v10 }
 0x26a   : > { %v1213_v12 = vpop.eup %891  ;;  %v469_v13 = vmul.f32 1.442695, %v462_v11 }
 0x26b   : > { %548 = vperm.xlu0 %888, %v1213_v12   ;;  %v894_v14 = vpop.eup %893 }
 0x26c   : > { %895 = vpow2.f32 %v469_v13 }
 0x270   : > { %543 = vperm.xlu2 %886, %v894_v14  }
 0x272   : > { %v1216_v15 = vpop.eup %895 }
 0x273   : > { %v510_v0 = vmul.f32 %v1216_v15, %v506_v61 }
 0x278   : > { %553 = vperm.xlu2 %886, %v1216_v15  }
 0x2aa   : > { %v474_v20 = vpop.permute.xlu2 %473 }
 0x2ab   : > { %v491_v21 = vsub.f32 %v1190_v44, %v474_v20 }
 0x2ad   : > { %v495_v22 = vmul.f32 1.442695, %v491_v21 }
 0x2af   : > { %897 = vpow2.f32 %v495_v22 }
 0x2b2   : > { %v479_v23 = vpop.permute.xlu2 %478 }
 0x2b3   : > { %v492_v24 = vsub.f32 %v1194_v47, %v479_v23  ;;  %v504_v47 = vld [vmem:[#allocation4 + $0x8] sm:$0xff] }
 0x2b4   : > { %v508_v48 = vmul.f32 %v894_v14, %v504_v47 }
 0x2b5   : > { %v898_v25 = vpop.eup %897  ;;  %v497_v26 = vmul.f32 1.442695, %v492_v24 }
 0x2b6   : > { %780 = vmatmul.msk.f32.vlgmr.msra.gmra.mxu2 %vm366_vm2, %v898_v25  ;;  %v511_v27 = vsel %vm366_vm2, %v898_v25, 0.0 }
 0x2b7   : > { %899 = vpow2.f32 %v497_v26  ;;  %512 = vadd.xlane.f32.xlu0 %v511_v27 }
 0x2ba   : > { %v484_v28 = vpop.permute.xlu2 %483 }
 0x2bb   : > { %v493_v29 = vsub.f32 %v1198_v50, %v484_v28 }
 0x2bd   : > { %v900_v30 = vpop.eup %899  ;;  %v499_v31 = vmul.f32 1.442695, %v493_v29 }
 0x2be   : > { %781 = vmatmul.msk.f32.gmra.mxu2 %vm366_vm2, %v900_v30  ;;  %v514_v32 = vsel %vm366_vm2, %v900_v30, 0.0 }
 0x2bf   : > { %901 = vpow2.f32 %v499_v31  ;;  %515 = vadd.xlane.f32.xlu2 %v514_v32 }
 0x2c2   : > { %v489_v33 = vpop.permute.xlu2 %488 }
 0x2c3   : > { %v494_v34 = vsub.f32 %v1202_v53, %v489_v33  ;;  %v505_v53 = vld [vmem:[#allocation4 + $0x10] sm:$0xff] }
 0x2c4   : > { %v509_v56 = vmul.f32 %v1213_v12, %v505_v53 }
 0x2c5   : > { %v902_v35 = vpop.eup %901  ;;  %v501_v36 = vmul.f32 1.442695, %v494_v34 }
 0x2c6   : > { %782 = vmatmul.msk.f32.gmra.mxu2 %vm366_vm2, %v902_v35  ;;  %v517_v37 = vsel %vm366_vm2, %v902_v35, 0.0 }
 0x2c7   : > { %903 = vpow2.f32 %v501_v36  ;;  %518 = vadd.xlane.f32.xlu1 %v517_v37 }
 0x2ca   : > { %v544_v40 = vpop.permute.xlu2 %543 }
 0x2cb   : > { %v557_v62 = vmul.f32 %v544_v40, %v533_v60 }
 0x2cd   : > { %v904_v38 = vpop.eup %903  ;;  %v539_v49 = vpop.permute.xlu1 %538 }
 0x2ce   : > { %783 = vmatmul.msk.f32.gmra.mxu2 %vm366_vm2, %v904_v38  ;;  %v520_v39 = vsel %vm366_vm2, %v904_v38, 0.0  ;;  %v556_v54 = vmul.f32 %v539_v49, %v532_v52 }
 0x2cf   : > { %521 = vadd.xlane.f32.xlu0 %v520_v39 }
 0x2d2   : > { %v554_v44 = vpop.permute.xlu2 %553 }
 0x2d3   : > { %v559_v9 = vmul.f32 %v554_v44, %v535_v8 }
 0x2dd   : > { %v549_v41 = vpop.permute.xlu0 %548 }
 0x2de   : > { %v558_v5 = vmul.f32 %v549_v41, %v534_v4 }
 0x32a   : > { %v513_v45 = vpop.xlane.xlu0 %512 }
 0x32b   : > { %v523_v46 = vadd.f32 %v513_v45, %v507_v43 }
 0x32d   : > { %528 = vst.msk [vmem:[#allocation4] sm:$0xff] %vm527_vm4, %v523_v46 }
 0x332   : > { %v516_v50 = vpop.xlane.xlu2 %515 }
 0x333   : > { %v524_v51 = vadd.f32 %v516_v50, %v508_v48 }
 0x335   : > { %529 = vst.msk [vmem:[#allocation4 + $0x8] sm:$0xff] %vm527_vm4, %v524_v51 }
 0x339   : > { %v593_v55 = vpop.f32.mrf.mxu2 }
 0x33a   : > { %v605_v57 = vadd.f32 %v593_v55, %v556_v54  ;;  %v519_v58 = vpop.xlane.xlu1 %518 }
 0x33b   : > { %v525_v59 = vadd.f32 %v519_v58, %v509_v56 }
 0x33c   : > { %609 = vst [vmem:[#allocation5 + $0x10] sm:$0xff] %v605_v57 }
 0x33d   : > { %530 = vst.msk [vmem:[#allocation4 + $0x10] sm:$0xff] %vm527_vm4, %v525_v59 }
 0x341   : > { %v596_v63 = vpop.f32.mrf.mxu2 }
 0x342   : > { %v606_v1 = vadd.f32 %v596_v63, %v557_v62  ;;  %v522_v2 = vpop.xlane.xlu0 %521 }
 0x343   : > { %v526_v3 = vadd.f32 %v522_v2, %v510_v0 }
 0x344   : > { %610 = vst [vmem:[#allocation5] sm:$0xff] %v606_v1 }
 0x345   : > { %531 = vst.msk [vmem:[#allocation4 + $0x18] sm:$0xff] %vm527_vm4, %v526_v3 }
 0x349   : > { %v599_v6 = vpop.f32.mrf.mxu2 }
 0x34a   : > { %v607_v7 = vadd.f32 %v599_v6, %v558_v5 }
 0x34c   : > { %611 = vst [vmem:[#allocation5 + $0x18] sm:$0xff] %v607_v7 }
 0x350   : > { %620 = sbr.rel (%p784_p2) target bundleno = 988 (0x3dc), region = 40 }
 0x351   : > { %v602_v10 = vpop.f32.mrf.mxu2 }
 0x352   : > { %v608_v11 = vadd.f32 %v602_v10, %v559_v9 }
 0x354   : > { %612 = vst [vmem:[#allocation5 + $0x8] sm:$0xff] %v608_v11 }
 0x355   : > { %v623_v12 = vld [vmem:[#allocation4 + $0x10] sm:$0xff]  ;;  %v621_v13 = vld [vmem:[#allocation4] sm:$0xff]  ;;  %v1015_v14 = vmov 0   ;;  %v624_v15 = vld [vmem:[#allocation4 + $0x18] sm:$0xff] }
 0x356   : > { %906 = vset.pattern.permute.xlu1 %v1015_v14  ;;  %905 = vset.pattern.permute.xlu0 %v1015_v14  ;;  %907 = vrcp.f32 %v623_v12  ;;  %v622_v16 = vld [vmem:[#allocation4 + $0x8] sm:$0xff]  ;;  %v631_v21 = vld [vmem:[#allocation5 + $0x18] sm:$0xff]  ;;  %v629_v22 = vld [vmem:[#allocation5 + $0x10] sm:$0xff] }
 0x357   : > { %909 = vrcp.f32 %v621_v13  ;;  %v630_v28 = vld [vmem:[#allocation5] sm:$0xff] }
 0x358   : > { %911 = vrcp.f32 %v624_v15 }
 0x359   : > { %913 = vrcp.f32 %v622_v16 }
 0x35b   : > { %v632_v27 = vld [vmem:[#allocation5 + $0x8] sm:$0xff] }
 0x35c   : > { %v908_v17 = vpop.eup %907 }
 0x35d   : > { %v910_v18 = vpop.eup %909  ;;  %645 = vperm.xlu1 %906, %v908_v17  }
 0x35e   : > { %635 = vperm.xlu0 %905, %v910_v18   ;;  %v912_v19 = vpop.eup %911 }
 0x35f   : > { %v914_v20 = vpop.eup %913 }
 0x365   : > { %650 = vperm.xlu1 %906, %v912_v19  }
 0x366   : > { %640 = vperm.xlu0 %905, %v914_v20  }
 0x3cf   : > { %v646_v23 = vpop.permute.xlu1 %645 }
 0x3d0   : > { %v655_v24 = vmul.f32 %v646_v23, %v631_v21  ;;  %v636_v25 = vpop.permute.xlu0 %635 }
 0x3d1   : > { %v653_v26 = vmul.f32 %v636_v25, %v629_v22 }
 0x3d2   : > { %659 = vst [vmem:[%s1178_s30 + $0x10] sm:$0xff] %v655_v24 }
 0x3d3   : > { %657 = vst [vmem:[%s1178_s30] sm:$0xff] %v653_v26 }
 0x3d7   : > { %v651_v29 = vpop.permute.xlu1 %650 }
 0x3d8   : > { %v656_v30 = vmul.f32 %v651_v29, %v632_v27  ;;  %v641_v31 = vpop.permute.xlu0 %640 }
 0x3d9   : > { %v654_v32 = vmul.f32 %v641_v31, %v630_v28 }
 0x3da   : > { %660 = vst [vmem:[%s1178_s30 + $0x18] sm:$0xff] %v656_v30 }
 0x3db   : > { %658 = vst [vmem:[%s1178_s30 + $0x8] sm:$0xff] %v654_v32 }
 0x3dc PF: > { %s790_s15 = sshll.u32 %s997_s16, 5  ;;  %s674_s9 = sshll.u32 %s1178_s30, 4  ;;  %s675_s9 = int_to_ptr.vmem [resolvable:$true] %s674_s9 }
 0x3dd   : > { %s673_s5 = scalar_lea.hbm %s1295_s3, %s790_s15  ;;  %s662_s11 = scalar_lea.sflag [#allocation7], %s239_s6 }
 0x3de   : > { %s676_s10 = sshll.u32 %s673_s5, 4  ;;  %s935_s16 = scalar_lea.hbm %s1295_s3, 64  ;;  %s677_s10 = int_to_ptr.hbm [resolvable:$true] %s676_s10 }
 0x3df   : > { %s929_s26 = sshra.s32 %s677_s10, 4  ;;  %s930_s26 = int_to_ptr.hbm [resolvable:$true] %s929_s26 }
 0x3e0   : > { %s931_s20 = scalar_lea.hbm %s930_s26, 32  ;;  %p936_p7 = scmp.lt.s32.totalorder %s930_s26, %s1295_s3 }
 0x3e1   : > { %p932_p4 = scmp.ne.s32.totalorder %s930_s26, %s931_s20  ;;  %p937_p8 = scmp.lt.s32.totalorder %s935_s16, %s931_s20 }
 0x3e3   : > { %p933_p5 = pnand %p932_p4, %p1087_p3  ;;  %p938_p10 = por %p937_p8, %p936_p7 }
 0x3e5   : > { %p934_p6 = pneg %p933_p5 }
 0x3e7   : > { %p939_p11 = pnand %p938_p10, %p934_p6 }
 0x3e9   : > { %942 = shalt.err (!%p939_p11)
}
 0x3ea   : > { %s1016_s6 = smov 128   ;;  %s1017_s30 = smov 8  }
 0x3eb   : > { %807 = dma.vmem_to_hbm [thread:$0]  (%p1087_p3), %s675_s9, 512, %s677_s10, %s662_s11, %s1016_s6, %s1016_s6, %s1017_s30  }
 0x3ec PF: > { %p813_p12 = scmp.ge.s32.totalorder %s1009_s19, 2  ;;  %s691_s15 = sand.u32 1, %s981_s12  }
 0x3ed   : > { %s692_s7 = scalar_lea.sflag [#allocation7], %s691_s15 }
 0x3ee   : > { %p810_p13 = pnand %p813_p12, %p1097_p9 }
 0x3f0   : > { %p811_p0 = pneg %p810_p13 }
 0x3f2   : > { %976 = dma.done.wait (%p811_p0), %s692_s7, 512  }
 0x3f3   : > { %978 = vsyncadd (%p811_p0), %s692_s7, 4294966784  ;;  %s16_s19 = sadd.s32 1, %s1009_s19   ;;  %s1298_s12 = smov %s985_s13 }
 0x3f4   : > { %p13_p1 = scmp.ge.s32.totalorder %s16_s19, 6   ;;  %s1299_s13 = smov %s989_s14 }
 0x3f5   : > { %s1300_s14 = smov %s1105_s28  ;;  %s1301_s15 = smov %s1001_s17 }
 0x3f6   : > { %s1302_s16 = smov %s1005_s18  ;;  %s1303_s17 = smov %s1306_s22 }
 0x3f7   : > { %s1304_s18 = smov %s1310_s23  ;;  %15 = sbr.rel (!%p13_p1) target bundleno = 5 (0x5), region = 75 }
 0x3fc   :  { %698 = vsyncpa [#allocation7], 1 }
 0x3fd   :  { %700 = vsyncpa [#allocation7 + $0x1], 1 }

</bundles_post_ra>
